<compile_context>
chip_gen: v7x
topology: tpu7x:2x2x1
jax: 0.10.0
libtpu: 0.0.40
codegen_flags: <defaults>
</compile_context>

<pallas_src>
import functools

import jax
import jax.numpy as jnp
from jax.experimental import pallas as pl
from jax.experimental.pallas import tpu as pltpu


def _rnn_enc_kernel(ids_ref, len_ref, emb_ref,
                    w1_ref, b1_ref, w2_ref, b2_ref,
                    wih_ref, whh_ref, brnn_ref,
                    out_ref, xin_ref):
    """One batch chunk: one-hot embedding gather -> hoisted MLP -> Elman recurrence."""
    n_tok = xin_ref.shape[0]          # S * Cb, time-major within the chunk (t*Cb + b)
    n_b, n_h = out_ref.shape          # (Cb, Hp)
    n_steps = n_tok // n_b            # S
    n_voc = emb_ref.shape[0]          # Vp
    cdt = w1_ref.dtype                # matmul operand dtype (f32 or bf16)

    # ---- Phase 1: embedding gather as ONE one-hot MXU matmul (no scalar loop). ----
    ids = ids_ref[...]                                                   # (n_tok, 1) i32
    iota = jax.lax.broadcasted_iota(jnp.int32, (n_tok, n_voc), 1)
    one_hot = (ids == iota).astype(cdt)                                  # (n_tok, Vp)
    e = jnp.dot(one_hot, emb_ref[...], preferred_element_type=jnp.float32)

    # ---- Phase 2: time-invariant work batched over all tokens (3 big MXU matmuls). ----
    x = jnp.maximum(
        jnp.dot(e.astype(cdt), w1_ref[...], preferred_element_type=jnp.float32)
        + b1_ref[...], 0.0)
    x = jnp.maximum(
        jnp.dot(x.astype(cdt), w2_ref[...], preferred_element_type=jnp.float32)
        + b2_ref[...], 0.0)
    # Park X @ W_ih + (b_ih + b_hh) in VMEM scratch so the recurrence only keeps ~2 live
    # vregs (h, out) regardless of S instead of an S*Cb*Hp live value.
    xin_ref[...] = (
        jnp.dot(x.astype(cdt), wih_ref[...], preferred_element_type=jnp.float32)
        + brnn_ref[...])

    # ---- Phase 3: sequential Elman recurrence; serial path is only h @ W_hh + tanh. ----
    whh = whh_ref[...]
    last_t = len_ref[...] - 1                                            # (Cb, 1) i32
    h0 = jnp.tanh(xin_ref[pl.ds(0, n_b), :])                             # h_0 = 0
    out0 = jnp.where(last_t == 0, h0, jnp.zeros((n_b, n_h), jnp.float32))

    def step(t, carry):
        h, out = carry
        off = pl.multiple_of(t * n_b, 8)
        xt = xin_ref[pl.ds(off, n_b), :]
        h = jnp.tanh(xt + jnp.dot(h.astype(cdt), whh,
                                  preferred_element_type=jnp.float32))
        out = jnp.where(last_t == t, h, out)                             # out[b, len[b]-1]
        return h, out

    _, out = jax.lax.fori_loop(1, n_steps, step, (h0, out0),
                               unroll=(n_steps <= 16))
    out_ref[...] = out


def _round_up(x, m):
    return (x + m - 1) // m * m


def _pad2(a, r, c, dtype=None):
    a = jnp.pad(a, ((0, r - a.shape[0]), (0, c - a.shape[1])))
    return a if dtype is None else a.astype(dtype)


@functools.partial(jax.jit, static_argnames=("param_dtype",))
def rnn_enc_forward(src, src_len, params, *, param_dtype=jnp.float32):
    """src: (B, S) int, src_len: (B,) int -> (B, H) float32."""
    B, S = src.shape
    V, E = params["emb_w"].shape
    H = params["w1"].shape[1]

    Bp = _round_up(B, 8)        # fp32 sublane multiple
    Vp = _round_up(V, 128)      # one-hot contraction (lane) dim
    Ep = _round_up(E, 128)      # lane multiple
    Hp = _round_up(H, 128)

    # Batch-chunk grid axis: >1 only pays on v7x (2 TensorCores); serialized elsewhere.
    n_chunks = 2 if (Bp >= 16 and Bp % 16 == 0) else 1
    Cb = Bp // n_chunks

    # Zero-padding is numerically exact: padded rows/cols stay identically zero through
    # relu / tanh(0) = 0 and contribute nothing via zero-padded weight rows/cols.
    src_p = jnp.pad(src.astype(jnp.int32), ((0, Bp - B), (0, 0)))          # pad token 0
    len_p = jnp.pad(src_len.astype(jnp.int32), (0, Bp - B), constant_values=1)
    # Chunk-major, then time-major within the chunk: row = c*(S*Cb) + t*Cb + b_local.
    ids = (src_p.reshape(n_chunks, Cb, S).transpose(0, 2, 1)
           .reshape(n_chunks * S * Cb, 1))
    len_col = len_p.reshape(Bp, 1)

    emb_p = _pad2(params["emb_w"], Vp, Ep, param_dtype)
    w1_p = _pad2(params["w1"], Ep, Hp, param_dtype)
    w2_p = _pad2(params["w2"], Hp, Hp, param_dtype)
    wih_p = _pad2(params["wih"], Hp, Hp, param_dtype)
    whh_p = _pad2(params["whh"], Hp, Hp, param_dtype)
    b1_p = _pad2(params["b1"], 1, Hp)                        # biases stay f32 (post-accum)
    b2_p = _pad2(params["b2"], 1, Hp)
    brnn_p = _pad2(params["bih"] + params["bhh"], 1, Hp)     # b_ih + b_hh pre-summed

    # Explicit VMEM budget (v7x: 64 MiB physical, 32 MiB scoped default; v5e: 16 MiB).
    esz = jnp.dtype(param_dtype).itemsize
    tok = S * Cb
    weight_bytes = (Vp * Ep + Ep * Hp + 3 * Hp * Hp) * esz + 3 * Hp * 4
    act_bytes = tok * (Vp + Ep + 3 * Hp) * 4 + tok * 4 + Bp * 4 + Cb * Hp * 4
    vmem_budget = int(min(64 << 20,
                          max(16 << 20, 2 * (weight_bytes + act_bytes) + (4 << 20))))

    def full(shape):
        return pl.BlockSpec(shape, lambda c: (0, 0))

    out_p = pl.pallas_call(
        _rnn_enc_kernel,
        out_shape=jax.ShapeDtypeStruct((Bp, Hp), jnp.float32),
        grid=(n_chunks,),
        in_specs=[
            pl.BlockSpec((S * Cb, 1), lambda c: (c, 0)),     # token ids (time-major/chunk)
            pl.BlockSpec((Cb, 1), lambda c: (c, 0)),         # src_len
            full((Vp, Ep)),                                  # embedding table
            full((Ep, Hp)), full((1, Hp)),                   # w1, b1
            full((Hp, Hp)), full((1, Hp)),                   # w2, b2
            full((Hp, Hp)),                                  # W_ih^T
            full((Hp, Hp)),                                  # W_hh^T
            full((1, Hp)),                                   # b_ih + b_hh
        ],
        out_specs=pl.BlockSpec((Cb, Hp), lambda c: (c, 0)),
        scratch_shapes=[pltpu.VMEM((S * Cb, Hp), jnp.float32)],   # xin scratch
        compiler_params=pltpu.CompilerParams(
            dimension_semantics=("parallel",),
            vmem_limit_bytes=vmem_budget),
    )(ids, len_col, emb_p, w1_p, b1_p, w2_p, b2_p, wih_p, whh_p, brnn_p)

    return out_p[:B, :H]


def _ref_forward(src, src_len, params):
    """Pure-JAX reference of the PyTorch forward (eval mode)."""
    e = params["emb_w"][src]                                     # (B, S, E)
    x = jnp.maximum(e @ params["w1"] + params["b1"], 0.0)
    x = jnp.maximum(x @ params["w2"] + params["b2"], 0.0)        # (B, S, H)
    B, S, H = x.shape
    h = jnp.zeros((B, H), jnp.float32)
    outs = []
    for t in range(S):
        h = jnp.tanh(x[:, t] @ params["wih"] + params["bih"]
                     + h @ params["whh"] + params["bhh"])
        outs.append(h)
    out = jnp.stack(outs, axis=1)                                # (B, S, H)
    return out[jnp.arange(B), src_len - 1]


def _init_params(key, n_vocab, d_emb, d_hid):
    ks = jax.random.split(key, 10)
    s = 0.1
    emb_w = s * jax.random.normal(ks[0], (n_vocab, d_emb), jnp.float32)
    emb_w = emb_w.at[0].set(0.0)                                 # padding_idx=0
    return {
        "emb_w": emb_w,
        "w1": s * jax.random.normal(ks[1], (d_emb, d_hid), jnp.float32),
        "b1": s * jax.random.normal(ks[2], (1, d_hid), jnp.float32),
        "w2": s * jax.random.normal(ks[3], (d_hid, d_hid), jnp.float32),
        "b2": s * jax.random.normal(ks[4], (1, d_hid), jnp.float32),
        "wih": s * jax.random.normal(ks[5], (d_hid, d_hid), jnp.float32),
        "bih": s * jax.random.normal(ks[6], (1, d_hid), jnp.float32),
        "whh": s * jax.random.normal(ks[7], (d_hid, d_hid), jnp.float32),
        "bhh": s * jax.random.normal(ks[8], (1, d_hid), jnp.float32),
    }


if __name__ == "__main__":
    # Small config consistent with the module:
    # n_vocab=32, enc_d_emb=32, enc_d_hid=32, enc_n_layer=1, is_bidir=False
    B, S, V, E, H = 2, 8, 32, 32, 32

    key = jax.random.PRNGKey(0)
    k_src, k_par = jax.random.split(key)
    params = _init_params(k_par, V, E, H)

    src = jax.random.randint(k_src, (B, S), 1, V, dtype=jnp.int32)   # (B, S) int
    src_len = jnp.array([5, 8], dtype=jnp.int32)                     # (B,) int, 1<=len<=S

    ref = _ref_forward(src, src_len, params)

    # f32 path: tight parity with the PyTorch module.
    out = rnn_enc_forward(src, src_len, params)
    jax.block_until_ready(out)
    assert out.shape == (B, H)
    assert jnp.allclose(out, ref, atol=1e-4, rtol=1e-4), (
        f"f32 max abs err = {jnp.max(jnp.abs(out - ref))}")

    # bf16-weight fast path (MXU-native operands, f32 accumulation): looser tolerance.
    out_bf16 = rnn_enc_forward(src, src_len, params, param_dtype=jnp.bfloat16)
    jax.block_until_ready(out_bf16)
    assert jnp.allclose(out_bf16, ref, atol=5e-2, rtol=5e-2), (
        f"bf16 max abs err = {jnp.max(jnp.abs(out_bf16 - ref))}")

    print("KERNEL_OK")
</pallas_src>

<mosaic_0001>
module attributes {stable_mosaic.version = 11 : i64} {
  func.func @_rnn_enc_kernel(%arg0: i32, %arg1: memref<64x1xi32, #tpu.memory_space<vmem>>, %arg2: memref<8x1xi32, #tpu.memory_space<vmem>>, %arg3: memref<128x128xf32, #tpu.memory_space<vmem>>, %arg4: memref<128x128xf32, #tpu.memory_space<vmem>>, %arg5: memref<1x128xf32, #tpu.memory_space<vmem>>, %arg6: memref<128x128xf32, #tpu.memory_space<vmem>>, %arg7: memref<1x128xf32, #tpu.memory_space<vmem>>, %arg8: memref<128x128xf32, #tpu.memory_space<vmem>>, %arg9: memref<128x128xf32, #tpu.memory_space<vmem>>, %arg10: memref<1x128xf32, #tpu.memory_space<vmem>>, %arg11: memref<8x128xf32, #tpu.memory_space<vmem>>, %arg12: memref<64x128xf32, #tpu.memory_space<vmem>>) attributes {dimension_semantics = [#tpu.dimension_semantics<parallel>], iteration_bounds = array<i64: 1>, scalar_prefetch = 0 : i64, scratch_operands = 1 : i64, tpu.core_type = #tpu.core_type<tc>, window_params = [{transform_indices = @transform_0, window_bounds = array<i64: 64, 1>}, {transform_indices = @transform_1, window_bounds = array<i64: 8, 1>}, {pipeline_mode = #tpu.pipeline_mode<synchronous>, transform_indices = @transform_2, window_bounds = array<i64: 128, 128>}, {pipeline_mode = #tpu.pipeline_mode<synchronous>, transform_indices = @transform_3, window_bounds = array<i64: 128, 128>}, {pipeline_mode = #tpu.pipeline_mode<synchronous>, transform_indices = @transform_4, window_bounds = array<i64: 1, 128>}, {pipeline_mode = #tpu.pipeline_mode<synchronous>, transform_indices = @transform_5, window_bounds = array<i64: 128, 128>}, {pipeline_mode = #tpu.pipeline_mode<synchronous>, transform_indices = @transform_6, window_bounds = array<i64: 1, 128>}, {pipeline_mode = #tpu.pipeline_mode<synchronous>, transform_indices = @transform_7, window_bounds = array<i64: 128, 128>}, {pipeline_mode = #tpu.pipeline_mode<synchronous>, transform_indices = @transform_8, window_bounds = array<i64: 128, 128>}, {pipeline_mode = #tpu.pipeline_mode<synchronous>, transform_indices = @transform_9, window_bounds = array<i64: 1, 128>}, {transform_indices = @transform_10, window_bounds = array<i64: 8, 128>}]} {
    %c0 = arith.constant 0 : index
    %c0_0 = arith.constant 0 : index
    %0 = vector.load %arg1[%c0, %c0_0] : memref<64x1xi32, #tpu.memory_space<vmem>>, vector<64x1xi32>
    %1 = tpu.iota {dimensions = array<i32: 1>} : vector<64x128xi32>
    %2 = vector.broadcast %0 : vector<64x1xi32> to vector<64x128xi32>
    %3 = arith.cmpi eq, %2, %1 : vector<64x128xi32>
    %4 = arith.extui %3 : vector<64x128xi1> to vector<64x128xi32>
    %5 = arith.sitofp %4 : vector<64x128xi32> to vector<64x128xf32>
    %c0_1 = arith.constant 0 : index
    %c0_2 = arith.constant 0 : index
    %6 = vector.load %arg3[%c0_1, %c0_2] : memref<128x128xf32, #tpu.memory_space<vmem>>, vector<128x128xf32>
    %cst = arith.constant dense<0.000000e+00> : vector<64x128xf32>
    %7 = tpu.matmul %5, %6, %cst {dimension_numbers = #tpu.dot_dimension_numbers<[1], [0], [0], [1], [0, 0, 1, 1], [], []>} : vector<64x128xf32>, vector<128x128xf32>, vector<64x128xf32> -> vector<64x128xf32>
    %c0_3 = arith.constant 0 : index
    %c0_4 = arith.constant 0 : index
    %8 = vector.load %arg4[%c0_3, %c0_4] : memref<128x128xf32, #tpu.memory_space<vmem>>, vector<128x128xf32>
    %cst_5 = arith.constant dense<0.000000e+00> : vector<64x128xf32>
    %9 = tpu.matmul %7, %8, %cst_5 {dimension_numbers = #tpu.dot_dimension_numbers<[1], [0], [0], [1], [0, 0, 1, 1], [], []>} : vector<64x128xf32>, vector<128x128xf32>, vector<64x128xf32> -> vector<64x128xf32>
    %c0_6 = arith.constant 0 : index
    %c0_7 = arith.constant 0 : index
    %10 = vector.load %arg5[%c0_6, %c0_7] : memref<1x128xf32, #tpu.memory_space<vmem>>, vector<1x128xf32>
    %11 = vector.broadcast %10 : vector<1x128xf32> to vector<64x128xf32>
    %12 = arith.addf %9, %11 : vector<64x128xf32>
    %cst_8 = arith.constant 0.000000e+00 : f32
    %13 = vector.broadcast %cst_8 : f32 to vector<64x128xf32>
    %14 = arith.maximumf %12, %13 : vector<64x128xf32>
    %c0_9 = arith.constant 0 : index
    %c0_10 = arith.constant 0 : index
    %15 = vector.load %arg6[%c0_9, %c0_10] : memref<128x128xf32, #tpu.memory_space<vmem>>, vector<128x128xf32>
    %cst_11 = arith.constant dense<0.000000e+00> : vector<64x128xf32>
    %16 = tpu.matmul %14, %15, %cst_11 {dimension_numbers = #tpu.dot_dimension_numbers<[1], [0], [0], [1], [0, 0, 1, 1], [], []>} : vector<64x128xf32>, vector<128x128xf32>, vector<64x128xf32> -> vector<64x128xf32>
    %c0_12 = arith.constant 0 : index
    %c0_13 = arith.constant 0 : index
    %17 = vector.load %arg7[%c0_12, %c0_13] : memref<1x128xf32, #tpu.memory_space<vmem>>, vector<1x128xf32>
    %18 = vector.broadcast %17 : vector<1x128xf32> to vector<64x128xf32>
    %19 = arith.addf %16, %18 : vector<64x128xf32>
    %cst_14 = arith.constant 0.000000e+00 : f32
    %20 = vector.broadcast %cst_14 : f32 to vector<64x128xf32>
    %21 = arith.maximumf %19, %20 : vector<64x128xf32>
    %c0_15 = arith.constant 0 : index
    %c0_16 = arith.constant 0 : index
    %22 = vector.load %arg8[%c0_15, %c0_16] : memref<128x128xf32, #tpu.memory_space<vmem>>, vector<128x128xf32>
    %cst_17 = arith.constant dense<0.000000e+00> : vector<64x128xf32>
    %23 = tpu.matmul %21, %22, %cst_17 {dimension_numbers = #tpu.dot_dimension_numbers<[1], [0], [0], [1], [0, 0, 1, 1], [], []>} : vector<64x128xf32>, vector<128x128xf32>, vector<64x128xf32> -> vector<64x128xf32>
    %c0_18 = arith.constant 0 : index
    %c0_19 = arith.constant 0 : index
    %24 = vector.load %arg10[%c0_18, %c0_19] : memref<1x128xf32, #tpu.memory_space<vmem>>, vector<1x128xf32>
    %25 = vector.broadcast %24 : vector<1x128xf32> to vector<64x128xf32>
    %26 = arith.addf %23, %25 : vector<64x128xf32>
    %c0_20 = arith.constant 0 : index
    %c0_21 = arith.constant 0 : index
    %27 = vector.load %arg12[%c0_20, %c0_21] : memref<64x128xf32, #tpu.memory_space<vmem>>, vector<64x128xf32>
    tpu.vector_store %arg12[%c0_20, %c0_21], %26 {strides = array<i32>} : memref<64x128xf32, #tpu.memory_space<vmem>>, vector<64x128xf32>,
    %c0_22 = arith.constant 0 : index
    %c0_23 = arith.constant 0 : index
    %28 = vector.load %arg9[%c0_22, %c0_23] : memref<128x128xf32, #tpu.memory_space<vmem>>, vector<128x128xf32>
    %c0_24 = arith.constant 0 : index
    %c0_25 = arith.constant 0 : index
    %29 = vector.load %arg2[%c0_24, %c0_25] : memref<8x1xi32, #tpu.memory_space<vmem>>, vector<8x1xi32>
    %c1_i32 = arith.constant 1 : i32
    %30 = vector.broadcast %c1_i32 : i32 to vector<8x1xi32>
    %31 = arith.subi %29, %30 : vector<8x1xi32>
    %c0_26 = arith.constant 0 : index
    %c0_27 = arith.constant 0 : index
    %32 = vector.load %arg12[%c0_26, %c0_27] : memref<64x128xf32, #tpu.memory_space<vmem>>, vector<8x128xf32>
    %33 = math.tanh %32 : vector<8x128xf32>
    %c0_i32 = arith.constant 0 : i32
    %34 = vector.broadcast %c0_i32 : i32 to vector<8x1xi32>
    %35 = arith.cmpi eq, %31, %34 : vector<8x1xi32>
    %cst_28 = arith.constant 0.000000e+00 : f32
    %36 = vector.broadcast %cst_28 : f32 to vector<8x128xf32>
    %37 = vector.shape_cast %35 : vector<8x1xi1> to vector<8x1xi1>
    %38 = vector.broadcast %37 : vector<8x1xi1> to vector<8x128xi1>
    %39 = arith.select %38, %33, %36 : vector<8x128xi1>, vector<8x128xf32>
    %c1_i32_29 = arith.constant 1 : i32
    %c8_i32 = arith.constant 8 : i32
    %40 = arith.muli %c1_i32_29, %c8_i32 : i32
    %41 = tpu.assume_multiple %40, 8 : i32
    %42 = arith.index_cast %41 : i32 to index
    %c0_30 = arith.constant 0 : index
    %43 = vector.load %arg12[%42, %c0_30] : memref<64x128xf32, #tpu.memory_space<vmem>>, vector<8x128xf32>
    %cst_31 = arith.constant dense<0.000000e+00> : vector<8x128xf32>
    %44 = tpu.matmul %33, %28, %cst_31 {dimension_numbers = #tpu.dot_dimension_numbers<[1], [0], [0], [1], [0, 0, 1, 1], [], []>} : vector<8x128xf32>, vector<128x128xf32>, vector<8x128xf32> -> vector<8x128xf32>
    %45 = arith.addf %43, %44 : vector<8x128xf32>
    %46 = math.tanh %45 : vector<8x128xf32>
    %47 = vector.broadcast %c1_i32_29 : i32 to vector<8x1xi32>
    %48 = arith.cmpi eq, %31, %47 : vector<8x1xi32>
    %49 = vector.shape_cast %48 : vector<8x1xi1> to vector<8x1xi1>
    %50 = vector.broadcast %49 : vector<8x1xi1> to vector<8x128xi1>
    %51 = arith.select %50, %46, %39 : vector<8x128xi1>, vector<8x128xf32>
    %c2_i32 = arith.constant 2 : i32
    %c8_i32_32 = arith.constant 8 : i32
    %52 = arith.muli %c2_i32, %c8_i32_32 : i32
    %53 = tpu.assume_multiple %52, 8 : i32
    %54 = arith.index_cast %53 : i32 to index
    %c0_33 = arith.constant 0 : index
    %55 = vector.load %arg12[%54, %c0_33] : memref<64x128xf32, #tpu.memory_space<vmem>>, vector<8x128xf32>
    %cst_34 = arith.constant dense<0.000000e+00> : vector<8x128xf32>
    %56 = tpu.matmul %46, %28, %cst_34 {dimension_numbers = #tpu.dot_dimension_numbers<[1], [0], [0], [1], [0, 0, 1, 1], [], []>} : vector<8x128xf32>, vector<128x128xf32>, vector<8x128xf32> -> vector<8x128xf32>
    %57 = arith.addf %55, %56 : vector<8x128xf32>
    %58 = math.tanh %57 : vector<8x128xf32>
    %59 = vector.broadcast %c2_i32 : i32 to vector<8x1xi32>
    %60 = arith.cmpi eq, %31, %59 : vector<8x1xi32>
    %61 = vector.shape_cast %60 : vector<8x1xi1> to vector<8x1xi1>
    %62 = vector.broadcast %61 : vector<8x1xi1> to vector<8x128xi1>
    %63 = arith.select %62, %58, %51 : vector<8x128xi1>, vector<8x128xf32>
    %c3_i32 = arith.constant 3 : i32
    %c8_i32_35 = arith.constant 8 : i32
    %64 = arith.muli %c3_i32, %c8_i32_35 : i32
    %65 = tpu.assume_multiple %64, 8 : i32
    %66 = arith.index_cast %65 : i32 to index
    %c0_36 = arith.constant 0 : index
    %67 = vector.load %arg12[%66, %c0_36] : memref<64x128xf32, #tpu.memory_space<vmem>>, vector<8x128xf32>
    %cst_37 = arith.constant dense<0.000000e+00> : vector<8x128xf32>
    %68 = tpu.matmul %58, %28, %cst_37 {dimension_numbers = #tpu.dot_dimension_numbers<[1], [0], [0], [1], [0, 0, 1, 1], [], []>} : vector<8x128xf32>, vector<128x128xf32>, vector<8x128xf32> -> vector<8x128xf32>
    %69 = arith.addf %67, %68 : vector<8x128xf32>
    %70 = math.tanh %69 : vector<8x128xf32>
    %71 = vector.broadcast %c3_i32 : i32 to vector<8x1xi32>
    %72 = arith.cmpi eq, %31, %71 : vector<8x1xi32>
    %73 = vector.shape_cast %72 : vector<8x1xi1> to vector<8x1xi1>
    %74 = vector.broadcast %73 : vector<8x1xi1> to vector<8x128xi1>
    %75 = arith.select %74, %70, %63 : vector<8x128xi1>, vector<8x128xf32>
    %c4_i32 = arith.constant 4 : i32
    %c8_i32_38 = arith.constant 8 : i32
    %76 = arith.muli %c4_i32, %c8_i32_38 : i32
    %77 = tpu.assume_multiple %76, 8 : i32
    %78 = arith.index_cast %77 : i32 to index
    %c0_39 = arith.constant 0 : index
    %79 = vector.load %arg12[%78, %c0_39] : memref<64x128xf32, #tpu.memory_space<vmem>>, vector<8x128xf32>
    %cst_40 = arith.constant dense<0.000000e+00> : vector<8x128xf32>
    %80 = tpu.matmul %70, %28, %cst_40 {dimension_numbers = #tpu.dot_dimension_numbers<[1], [0], [0], [1], [0, 0, 1, 1], [], []>} : vector<8x128xf32>, vector<128x128xf32>, vector<8x128xf32> -> vector<8x128xf32>
    %81 = arith.addf %79, %80 : vector<8x128xf32>
    %82 = math.tanh %81 : vector<8x128xf32>
    %83 = vector.broadcast %c4_i32 : i32 to vector<8x1xi32>
    %84 = arith.cmpi eq, %31, %83 : vector<8x1xi32>
    %85 = vector.shape_cast %84 : vector<8x1xi1> to vector<8x1xi1>
    %86 = vector.broadcast %85 : vector<8x1xi1> to vector<8x128xi1>
    %87 = arith.select %86, %82, %75 : vector<8x128xi1>, vector<8x128xf32>
    %c5_i32 = arith.constant 5 : i32
    %c8_i32_41 = arith.constant 8 : i32
    %88 = arith.muli %c5_i32, %c8_i32_41 : i32
    %89 = tpu.assume_multiple %88, 8 : i32
    %90 = arith.index_cast %89 : i32 to index
    %c0_42 = arith.constant 0 : index
    %91 = vector.load %arg12[%90, %c0_42] : memref<64x128xf32, #tpu.memory_space<vmem>>, vector<8x128xf32>
    %cst_43 = arith.constant dense<0.000000e+00> : vector<8x128xf32>
    %92 = tpu.matmul %82, %28, %cst_43 {dimension_numbers = #tpu.dot_dimension_numbers<[1], [0], [0], [1], [0, 0, 1, 1], [], []>} : vector<8x128xf32>, vector<128x128xf32>, vector<8x128xf32> -> vector<8x128xf32>
    %93 = arith.addf %91, %92 : vector<8x128xf32>
    %94 = math.tanh %93 : vector<8x128xf32>
    %95 = vector.broadcast %c5_i32 : i32 to vector<8x1xi32>
    %96 = arith.cmpi eq, %31, %95 : vector<8x1xi32>
    %97 = vector.shape_cast %96 : vector<8x1xi1> to vector<8x1xi1>
    %98 = vector.broadcast %97 : vector<8x1xi1> to vector<8x128xi1>
    %99 = arith.select %98, %94, %87 : vector<8x128xi1>, vector<8x128xf32>
    %c6_i32 = arith.constant 6 : i32
    %c8_i32_44 = arith.constant 8 : i32
    %100 = arith.muli %c6_i32, %c8_i32_44 : i32
    %101 = tpu.assume_multiple %100, 8 : i32
    %102 = arith.index_cast %101 : i32 to index
    %c0_45 = arith.constant 0 : index
    %103 = vector.load %arg12[%102, %c0_45] : memref<64x128xf32, #tpu.memory_space<vmem>>, vector<8x128xf32>
    %cst_46 = arith.constant dense<0.000000e+00> : vector<8x128xf32>
    %104 = tpu.matmul %94, %28, %cst_46 {dimension_numbers = #tpu.dot_dimension_numbers<[1], [0], [0], [1], [0, 0, 1, 1], [], []>} : vector<8x128xf32>, vector<128x128xf32>, vector<8x128xf32> -> vector<8x128xf32>
    %105 = arith.addf %103, %104 : vector<8x128xf32>
    %106 = math.tanh %105 : vector<8x128xf32>
    %107 = vector.broadcast %c6_i32 : i32 to vector<8x1xi32>
    %108 = arith.cmpi eq, %31, %107 : vector<8x1xi32>
    %109 = vector.shape_cast %108 : vector<8x1xi1> to vector<8x1xi1>
    %110 = vector.broadcast %109 : vector<8x1xi1> to vector<8x128xi1>
    %111 = arith.select %110, %106, %99 : vector<8x128xi1>, vector<8x128xf32>
    %c7_i32 = arith.constant 7 : i32
    %c8_i32_47 = arith.constant 8 : i32
    %112 = arith.muli %c7_i32, %c8_i32_47 : i32
    %113 = tpu.assume_multiple %112, 8 : i32
    %114 = arith.index_cast %113 : i32 to index
    %c0_48 = arith.constant 0 : index
    %115 = vector.load %arg12[%114, %c0_48] : memref<64x128xf32, #tpu.memory_space<vmem>>, vector<8x128xf32>
    %cst_49 = arith.constant dense<0.000000e+00> : vector<8x128xf32>
    %116 = tpu.matmul %106, %28, %cst_49 {dimension_numbers = #tpu.dot_dimension_numbers<[1], [0], [0], [1], [0, 0, 1, 1], [], []>} : vector<8x128xf32>, vector<128x128xf32>, vector<8x128xf32> -> vector<8x128xf32>
    %117 = arith.addf %115, %116 : vector<8x128xf32>
    %118 = math.tanh %117 : vector<8x128xf32>
    %119 = vector.broadcast %c7_i32 : i32 to vector<8x1xi32>
    %120 = arith.cmpi eq, %31, %119 : vector<8x1xi32>
    %121 = vector.shape_cast %120 : vector<8x1xi1> to vector<8x1xi1>
    %122 = vector.broadcast %121 : vector<8x1xi1> to vector<8x128xi1>
    %123 = arith.select %122, %118, %111 : vector<8x128xi1>, vector<8x128xf32>
    %c7_i32_50 = arith.constant 7 : i32
    %c0_51 = arith.constant 0 : index
    %c0_52 = arith.constant 0 : index
    %124 = vector.load %arg11[%c0_51, %c0_52] : memref<8x128xf32, #tpu.memory_space<vmem>>, vector<8x128xf32>
    tpu.vector_store %arg11[%c0_51, %c0_52], %123 {strides = array<i32>} : memref<8x128xf32, #tpu.memory_space<vmem>>, vector<8x128xf32>,
    return
  }
  func.func @transform_0(%arg0: i32) -> (i32, i32) {
    %c0_i32 = arith.constant 0 : i32
    %c0_i32_0 = arith.constant 0 : i32
    return %arg0, %c0_i32 : i32, i32
  }
  func.func @transform_1(%arg0: i32) -> (i32, i32) {
    %c0_i32 = arith.constant 0 : i32
    %c0_i32_0 = arith.constant 0 : i32
    return %arg0, %c0_i32 : i32, i32
  }
  func.func @transform_2(%arg0: i32) -> (i32, i32) {
    %c0_i32 = arith.constant 0 : i32
    %c0_i32_0 = arith.constant 0 : i32
    %c0_i32_1 = arith.constant 0 : i32
    return %c0_i32, %c0_i32_0 : i32, i32
  }
  func.func @transform_3(%arg0: i32) -> (i32, i32) {
    %c0_i32 = arith.constant 0 : i32
    %c0_i32_0 = arith.constant 0 : i32
    %c0_i32_1 = arith.constant 0 : i32
    return %c0_i32, %c0_i32_0 : i32, i32
  }
  func.func @transform_4(%arg0: i32) -> (i32, i32) {
    %c0_i32 = arith.constant 0 : i32
    %c0_i32_0 = arith.constant 0 : i32
    %c0_i32_1 = arith.constant 0 : i32
    return %c0_i32, %c0_i32_0 : i32, i32
  }
  func.func @transform_5(%arg0: i32) -> (i32, i32) {
    %c0_i32 = arith.constant 0 : i32
    %c0_i32_0 = arith.constant 0 : i32
    %c0_i32_1 = arith.constant 0 : i32
    return %c0_i32, %c0_i32_0 : i32, i32
  }
  func.func @transform_6(%arg0: i32) -> (i32, i32) {
    %c0_i32 = arith.constant 0 : i32
    %c0_i32_0 = arith.constant 0 : i32
    %c0_i32_1 = arith.constant 0 : i32
    return %c0_i32, %c0_i32_0 : i32, i32
  }
  func.func @transform_7(%arg0: i32) -> (i32, i32) {
    %c0_i32 = arith.constant 0 : i32
    %c0_i32_0 = arith.constant 0 : i32
    %c0_i32_1 = arith.constant 0 : i32
    return %c0_i32, %c0_i32_0 : i32, i32
  }
  func.func @transform_8(%arg0: i32) -> (i32, i32) {
    %c0_i32 = arith.constant 0 : i32
    %c0_i32_0 = arith.constant 0 : i32
    %c0_i32_1 = arith.constant 0 : i32
    return %c0_i32, %c0_i32_0 : i32, i32
  }
  func.func @transform_9(%arg0: i32) -> (i32, i32) {
    %c0_i32 = arith.constant 0 : i32
    %c0_i32_0 = arith.constant 0 : i32
    %c0_i32_1 = arith.constant 0 : i32
    return %c0_i32, %c0_i32_0 : i32, i32
  }
  func.func @transform_10(%arg0: i32) -> (i32, i32) {
    %c0_i32 = arith.constant 0 : i32
    %c0_i32_0 = arith.constant 0 : i32
    return %arg0, %c0_i32 : i32, i32
  }
}

</mosaic_0001>

<bundles_post_ra>
// kernel: rnn_enc_forward.1
= control target key start
LH: loop header
LB: loop body
LE: loop exit
PB: predicated region body
PF: predicated region fallthrough
CT: control target
= control target key end

     0   :  { %v2196_v0 = vmov 0   ;;  %v43_v62 = vlaneseq  ;;  %s2760_s0 = inlined_call_operand.vmem [shape: s32[64,1], index: 0, kind: input, shape index: {}]   ;;  %s2761_s2 = inlined_call_operand.vmem [shape: f32[128,128], index: 2, kind: input, shape index: {}]   ;;  %s2762_s1 = inlined_call_operand.vmem [shape: s32[8,1], index: 1, kind: input, shape index: {}]   ;;  %s2763_s3 = inlined_call_operand.vmem [shape: f32[128,128], index: 3, kind: input, shape index: {}]   ;;  %s2764_s5 = inlined_call_operand.vmem [shape: f32[128,128], index: 5, kind: input, shape index: {}]   ;;  %s2765_s7 = inlined_call_operand.vmem [shape: f32[128,128], index: 7, kind: input, shape index: {}]   ;;  %s2766_s4 = inlined_call_operand.vmem [shape: f32[1,128], index: 4, kind: input, shape index: {}]   ;;  %s2767_s8 = inlined_call_operand.vmem [shape: f32[128,128], index: 8, kind: input, shape index: {}]   ;;  %s2768_s6 = inlined_call_operand.vmem [shape: f32[1,128], index: 6, kind: input, shape index: {}]   ;;  %s2769_s9 = inlined_call_operand.vmem [shape: f32[1,128], index: 9, kind: input, shape index: {}]   ;;  %s2770_s10 = inlined_call_operand.vmem [shape: f32[8,128], index: 10, kind: output, shape index: {}]  }
   0x1   :  { %2178 = vset.pattern.permute.xlu0 %v2196_v0  ;;  %v35_v1 = vld [vmem:[%s2760_s0] sm:$0xff]  ;;  %2179 = vset.pattern.permute.xlu1 %v2196_v0  ;;  %v37_v2 = vld [vmem:[%s2760_s0 + $0x10] sm:$0xff]  ;;  %v36_v3 = vld [vmem:[%s2760_s0 + $0x8] sm:$0xff] }
   0x2   :  { %46 = vperm.xlu0 %2178, %v35_v1   ;;  %52 = vperm.xlu1 %2179, %v37_v2   ;;  %v38_v4 = vld [vmem:[%s2760_s0 + $0x18] sm:$0xff]  ;;  %v93_v5 = vld [vmem:[%s2761_s2] sm:$0xff]  ;;  %v94_v6 = vld [vmem:[%s2761_s2 + $0x8] sm:$0xff]  ;;  %v2388_v63 = vand.u32 127, %v43_v62 }
   0x3   :  { %v95_v7 = vld [vmem:[%s2761_s2 + $0x10] sm:$0xff]  ;;  %v96_v8 = vld [vmem:[%s2761_s2 + $0x18] sm:$0xff]  ;;  %v638_v9 = vld [vmem:[%s2762_s1] sm:$0xff]  ;;  %v1877_v10 = vpack.c.bf16 %v94_v6, %v93_v5 }
   0x4   :  { %v1881_v11 = vpack.c.bf16 %v96_v8, %v95_v7  ;;  %v97_v12 = vld [vmem:[%s2761_s2 + $0x20] sm:$0xff]  ;;  %v98_v13 = vld [vmem:[%s2761_s2 + $0x28] sm:$0xff]  ;;  %v2297_v16 = vadd.s32 4294967295, %v638_v9  ;;  %v99_v18 = vld [vmem:[%s2761_s2 + $0x30] sm:$0xff] }
   0x5   :  { %v39_v14 = vld [vmem:[%s2760_s0 + $0x20] sm:$0xff]  ;;  %v40_v15 = vld [vmem:[%s2760_s0 + $0x28] sm:$0xff]  ;;  %1878 = vmatprep.subr.bf16.mxu0 %v1877_v10  ;;  %v1885_v17 = vpack.c.bf16 %v98_v13, %v97_v12  ;;  %v100_v19 = vld [vmem:[%s2761_s2 + $0x38] sm:$0xff] }
   0x6   :  { %49 = vperm.xlu0 %2178, %v36_v3   ;;  %55 = vperm.xlu1 %2179, %v38_v4   ;;  %v41_v20 = vld [vmem:[%s2760_s0 + $0x30] sm:$0xff]  ;;  %vm642_vm0 = vcmp.eq.s32.totalorder %v2297_v16, 0  ;;  %v1889_v21 = vpack.c.bf16 %v100_v19, %v99_v18  ;;  %v101_v22 = vld [vmem:[%s2761_s2 + $0x40] sm:$0xff]  ;;  %v102_v23 = vld [vmem:[%s2761_s2 + $0x48] sm:$0xff]  ;;  %vm804_vm1 = vcmp.eq.s32.totalorder %v2297_v16, 2  ;;  %vm966_vm2 = vcmp.eq.s32.totalorder %v2297_v16, 4 }
   0x7   :  { %1880 = vmatpush3.bf16.msra.mxu0 %v1877_v10  ;;  %v643_v24 = vsel %vm642_vm0, 1, %v2196_v0  ;;  %v1893_v25 = vpack.c.bf16 %v102_v23, %v101_v22  ;;  %v103_v26 = vld [vmem:[%s2761_s2 + $0x50] sm:$0xff]  ;;  %v104_v27 = vld [vmem:[%s2761_s2 + $0x58] sm:$0xff]  ;;  %v805_v28 = vsel %vm804_vm1, 1, %v2196_v0  ;;  %v105_v30 = vld [vmem:[%s2761_s2 + $0x60] sm:$0xff]  ;;  %v967_v32 = vsel %vm966_vm2, 1, %v2196_v0 }
   0x8   :  { %1882 = vmatprep.subr.bf16.mxu0 %v1881_v11  ;;  %v1897_v29 = vpack.c.bf16 %v104_v27, %v103_v26  ;;  %v106_v31 = vld [vmem:[%s2761_s2 + $0x68] sm:$0xff]  ;;  %vm1128_vm3 = vcmp.eq.s32.totalorder %v2297_v16, 6  ;;  %v107_v34 = vld [vmem:[%s2761_s2 + $0x70] sm:$0xff]  ;;  %v108_v35 = vld [vmem:[%s2761_s2 + $0x78] sm:$0xff]  ;;  %v2197_v3 = vmov 1.0   ;;  %vm723_vm11 = vcmp.eq.s32.totalorder %v2297_v16, 1 }
   0x9   :  { %v1901_v33 = vpack.c.bf16 %v106_v31, %v105_v30  ;;  %v1129_v36 = vsel %vm1128_vm3, 1, %v2196_v0  ;;  %v1905_v37 = vpack.c.bf16 %v108_v35, %v107_v34  ;;  %v214_v38 = vld [vmem:[%s2763_s3] sm:$0xff]  ;;  %v215_v39 = vld [vmem:[%s2763_s3 + $0x8] sm:$0xff]  ;;  %v216_v40 = vld [vmem:[%s2763_s3 + $0x10] sm:$0xff]  ;;  %v724_v10 = vsel %vm723_vm11, 1, %v2196_v0 }
   0xa   :  { %58 = vperm.xlu0 %2178, %v39_v14   ;;  %61 = vperm.xlu1 %2179, %v40_v15   ;;  %v1909_v41 = vpack.c.bf16 %v215_v39, %v214_v38  ;;  %v217_v42 = vld [vmem:[%s2763_s3 + $0x18] sm:$0xff]  ;;  %v218_v44 = vld [vmem:[%s2763_s3 + $0x20] sm:$0xff]  ;;  %v219_v45 = vld [vmem:[%s2763_s3 + $0x28] sm:$0xff]  ;;  %vm885_vm12 = vcmp.eq.s32.totalorder %v2297_v16, 3  ;;  %vm1047_vm13 = vcmp.eq.s32.totalorder %v2297_v16, 5  ;;  %vm1209_vm14 = vcmp.eq.s32.totalorder %v2297_v16, 7 }
   0xb   :  { %1884 = vmatpush3.bf16.msra.mxu0 %v1881_v11  ;;  %v1913_v43 = vpack.c.bf16 %v217_v42, %v216_v40  ;;  %v1917_v46 = vpack.c.bf16 %v219_v45, %v218_v44  ;;  %v220_v47 = vld [vmem:[%s2763_s3 + $0x30] sm:$0xff]  ;;  %v221_v48 = vld [vmem:[%s2763_s3 + $0x38] sm:$0xff]  ;;  %v222_v50 = vld [vmem:[%s2763_s3 + $0x40] sm:$0xff]  ;;  %vm2199_vm0 = vmmov 0  }
   0xc   :  { %1886 = vmatprep.subr.bf16.mxu0 %v1885_v17  ;;  %1910 = vmatprep.subr.bf16.mxu1 %v1909_v41  ;;  %v1921_v49 = vpack.c.bf16 %v221_v48, %v220_v47  ;;  %v223_v51 = vld [vmem:[%s2763_s3 + $0x48] sm:$0xff]  ;;  %v224_v53 = vld [vmem:[%s2763_s3 + $0x50] sm:$0xff]  ;;  %v225_v54 = vld [vmem:[%s2763_s3 + $0x58] sm:$0xff] }
   0xd   :  { %1912 = vmatpush3.bf16.msra.mxu1 %v1909_v41  ;;  %v1925_v52 = vpack.c.bf16 %v223_v51, %v222_v50  ;;  %v1929_v55 = vpack.c.bf16 %v225_v54, %v224_v53  ;;  %v226_v56 = vld [vmem:[%s2763_s3 + $0x60] sm:$0xff]  ;;  %v227_v57 = vld [vmem:[%s2763_s3 + $0x68] sm:$0xff]  ;;  %v228_v59 = vld [vmem:[%s2763_s3 + $0x70] sm:$0xff] }
   0xe   :  { %64 = vperm.xlu0 %2178, %v41_v20   ;;  %1914 = vmatprep.subr.bf16.mxu1 %v1913_v43  ;;  %v1933_v58 = vpack.c.bf16 %v227_v57, %v226_v56  ;;  %v229_v60 = vld [vmem:[%s2763_s3 + $0x78] sm:$0xff]  ;;  %v350_v11 = vld [vmem:[%s2764_s5] sm:$0xff]  ;;  %v351_v12 = vld [vmem:[%s2764_s5 + $0x8] sm:$0xff] }
   0xf   :  { %1888 = vmatpush3.bf16.msra.mxu0 %v1885_v17  ;;  %v1937_v61 = vpack.c.bf16 %v229_v60, %v228_v59  ;;  %v42_v9 = vld [vmem:[%s2760_s0 + $0x38] sm:$0xff]  ;;  %v1941_v13 = vpack.c.bf16 %v351_v12, %v350_v11  ;;  %v352_v14 = vld [vmem:[%s2764_s5 + $0x10] sm:$0xff]  ;;  %v886_v17 = vsel %vm885_vm12, 1, %v2196_v0  ;;  %v354_v19 = vld [vmem:[%s2764_s5 + $0x20] sm:$0xff] }
  0x10   :  { %1890 = vmatprep.subr.bf16.mxu0 %v1889_v21  ;;  %67 = vperm.xlu1 %2179, %v42_v9   ;;  %v353_v15 = vld [vmem:[%s2764_s5 + $0x18] sm:$0xff]  ;;  %v355_v20 = vld [vmem:[%s2764_s5 + $0x28] sm:$0xff]  ;;  %v356_v23 = vld [vmem:[%s2764_s5 + $0x30] sm:$0xff] }
  0x11   :  { %1916 = vmatpush3.bf16.msra.mxu1 %v1913_v43  ;;  %v1945_v18 = vpack.c.bf16 %v353_v15, %v352_v14  ;;  %v1949_v22 = vpack.c.bf16 %v355_v20, %v354_v19  ;;  %v358_v16 = vld [vmem:[%s2764_s5 + $0x40] sm:$0xff]  ;;  %v359_v27 = vld [vmem:[%s2764_s5 + $0x48] sm:$0xff]  ;;  %v365_v38 = vld [vmem:[%s2764_s5 + $0x78] sm:$0xff] }
  0x12   :  { %645 = vperm.xlu0 %2178, %v643_v24   ;;  %1918 = vmatprep.subr.bf16.mxu1 %v1917_v46  ;;  %v357_v24 = vld [vmem:[%s2764_s5 + $0x38] sm:$0xff]  ;;  %v362_v31 = vld [vmem:[%s2764_s5 + $0x60] sm:$0xff]  ;;  %v487_v43 = vld [vmem:[%s2765_s7 + $0x8] sm:$0xff] }
  0x13   :  { %1892 = vmatpush3.bf16.msra.mxu0 %v1889_v21  ;;  %v1048_v21 = vsel %vm1047_vm13, 1, %v2196_v0  ;;  %v1953_v26 = vpack.c.bf16 %v357_v24, %v356_v23  ;;  %v486_v42 = vld [vmem:[%s2765_s7] sm:$0xff]  ;;  %v488_v44 = vld [vmem:[%s2765_s7 + $0x10] sm:$0xff]  ;;  %v489_v47 = vld [vmem:[%s2765_s7 + $0x18] sm:$0xff] }
  0x14   :  { %1894 = vmatprep.subr.bf16.mxu0 %v1893_v25  ;;  %726 = vperm.xlu1 %2179, %v724_v10   ;;  %v490_v50 = vld [vmem:[%s2765_s7 + $0x20] sm:$0xff]  ;;  %v491_v51 = vld [vmem:[%s2765_s7 + $0x28] sm:$0xff]  ;;  %v492_v53 = vld [vmem:[%s2765_s7 + $0x30] sm:$0xff] }
  0x15   :  { %1920 = vmatpush3.bf16.msra.mxu1 %v1917_v46  ;;  %v1973_v46 = vpack.c.bf16 %v487_v43, %v486_v42  ;;  %v493_v54 = vld [vmem:[%s2765_s7 + $0x38] sm:$0xff]  ;;  %v494_v56 = vld [vmem:[%s2765_s7 + $0x40] sm:$0xff]  ;;  %v495_v57 = vld [vmem:[%s2765_s7 + $0x48] sm:$0xff] }
  0x16   :  { %807 = vperm.xlu0 %2178, %v805_v28   ;;  %1922 = vmatprep.subr.bf16.mxu1 %v1921_v49  ;;  %v360_v28 = vld [vmem:[%s2764_s5 + $0x50] sm:$0xff]  ;;  %v497_v60 = vld [vmem:[%s2765_s7 + $0x58] sm:$0xff]  ;;  %v498_v62 = vld [vmem:[%s2765_s7 + $0x60] sm:$0xff] }
  0x17   :  { %1896 = vmatpush3.bf16.msra.mxu0 %v1893_v25  ;;  %v1210_v25 = vsel %vm1209_vm14, 1, %v2196_v0  ;;  %v361_v0 = vld [vmem:[%s2764_s5 + $0x58] sm:$0xff]  ;;  %v496_v59 = vld [vmem:[%s2765_s7 + $0x50] sm:$0xff]  ;;  %v622_v19 = vld [vmem:[%s2767_s8] sm:$0xff] }
  0x18   :  { %1898 = vmatprep.subr.bf16.mxu0 %v1897_v29  ;;  %888 = vperm.xlu1 %2179, %v886_v17   ;;  %v1961_v30 = vpack.c.bf16 %v361_v0, %v360_v28  ;;  %v500_v11 = vld [vmem:[%s2765_s7 + $0x70] sm:$0xff]  ;;  %v501_v12 = vld [vmem:[%s2765_s7 + $0x78] sm:$0xff]  ;;  %v623_v20 = vld [vmem:[%s2767_s8 + $0x8] sm:$0xff] }
  0x19   :  { %1924 = vmatpush3.bf16.msra.mxu1 %v1921_v49  ;;  %v1977_v49 = vpack.c.bf16 %v489_v47, %v488_v44  ;;  %v2533_v24 = vpack.c.bf16 %v623_v20, %v622_v19 }
  0x1a   :  { %969 = vperm.xlu0 %2178, %v967_v32   ;;  %1926 = vmatprep.subr.bf16.mxu1 %v1925_v52  ;;  %v363_v32 = vld [vmem:[%s2764_s5 + $0x68] sm:$0xff] }
  0x1b   :  { %1900 = vmatpush3.bf16.msra.mxu0 %v1897_v29  ;;  %v1957_v29 = vpack.c.bf16 %v359_v27, %v358_v16 }
  0x1c   :  { %1902 = vmatprep.subr.bf16.mxu0 %v1901_v33  ;;  %1050 = vperm.xlu1 %2179, %v1048_v21   ;;  %v624_v21 = vld [vmem:[%s2767_s8 + $0x10] sm:$0xff] }
  0x1d   :  { %1928 = vmatpush3.bf16.msra.mxu1 %v1925_v52  ;;  %v1981_v52 = vpack.c.bf16 %v491_v51, %v490_v50  ;;  %v630_v51 = vld [vmem:[%s2767_s8 + $0x40] sm:$0xff] }
  0x1e   :  { %1131 = vperm.xlu0 %2178, %v1129_v36   ;;  %1930 = vmatprep.subr.bf16.mxu1 %v1929_v55 }
  0x1f   :  { %1904 = vmatpush3.bf16.msra.mxu0 %v1901_v33  ;;  %v1965_v33 = vpack.c.bf16 %v363_v32, %v362_v31  ;;  %v627_v31 = vld [vmem:[%s2767_s8 + $0x28] sm:$0xff] }
  0x20   :  { %1906 = vmatprep.subr.bf16.mxu0 %v1905_v37  ;;  %1212 = vperm.xlu1 %2179, %v1210_v25   ;;  %v625_v25 = vld [vmem:[%s2767_s8 + $0x18] sm:$0xff] }
  0x21   :  { %1932 = vmatpush3.bf16.msra.mxu1 %v1929_v55  ;;  %v1985_v55 = vpack.c.bf16 %v493_v54, %v492_v53  ;;  %v2541_v0 = vpack.c.bf16 %v625_v25, %v624_v21  ;;  %v632_v54 = vld [vmem:[%s2767_s8 + $0x50] sm:$0xff] }
  0x22   :  { %1934 = vmatprep.subr.bf16.mxu1 %v1933_v58 }
  0x23   :  { %1908 = vmatpush3.bf16.msra.mxu0 %v1905_v37  ;;  %v364_v37 = vld [vmem:[%s2764_s5 + $0x70] sm:$0xff] }
  0x24   :  { %1942 = vmatprep.subr.bf16.mxu0 %v1941_v13  ;;  %v1969_v39 = vpack.c.bf16 %v365_v38, %v364_v37  ;;  %v2569_v38 = vld [vmem:[%s2768_s6] ss:$0 sm:$0xff] }
  0x25   :  { %1936 = vmatpush3.bf16.msra.mxu1 %v1933_v58  ;;  %v1989_v58 = vpack.c.bf16 %v495_v57, %v494_v56  ;;  %v634_v57 = vld [vmem:[%s2767_s8 + $0x60] sm:$0xff] }
  0x26   :  { %1938 = vmatprep.subr.bf16.mxu1 %v1937_v61 }
  0x29   :  { %1940 = vmatpush3.bf16.msra.mxu1 %v1937_v61  ;;  %v1993_v61 = vpack.c.bf16 %v497_v60, %v496_v59  ;;  %v636_v60 = vld [vmem:[%s2767_s8 + $0x70] sm:$0xff] }
  0x2a   :  { %1974 = vmatprep.subr.bf16.mxu1 %v1973_v46 }
  0x81   :  { %v47_v1 = vpop.permute.xlu0 %46  ;;  %v53_v2 = vpop.permute.xlu1 %52 }
  0x82   :  { %vm69_vm4 = vcmp.eq.s32.totalorder %v47_v1, %v2388_v63  ;;  %vm71_vm5 = vcmp.eq.s32.totalorder %v53_v2, %v2388_v63  ;;  %v2510_v2 = vld [vmem:[%s2766_s4] ss:$0 sm:$0xff] }
  0x83   :  { %1488 = vmatprep.mubr.msk.f32.mxu0 %vm69_vm4, %v2197_v3 }
  0x85   :  { %v50_v4 = vpop.permute.xlu0 %49  ;;  %v56_v5 = vpop.permute.xlu1 %55 }
  0x86   :  { %vm70_vm6 = vcmp.eq.s32.totalorder %v50_v4, %v2388_v63  ;;  %vm72_vm7 = vcmp.eq.s32.totalorder %v56_v5, %v2388_v63 }
  0x87   :  { %1489 = vmatmul.mubr.msk.f32.vlgmr.msra.gmra.mrb[0].mxu0 %vm70_vm6, %v2197_v3 }
  0x88   :  { %1491 = vmatprep.mubr.msk.f32.mxu0 %vm71_vm5, %v2197_v3  ;;  %1944 = vmatpush3.bf16.msra.mxu0 %v1941_v13  ;;  %v2001_v13 = vpack.c.bf16 %v501_v12, %v500_v11 }
  0x89   :  { %v59_v6 = vpop.permute.xlu0 %58  ;;  %v62_v7 = vpop.permute.xlu1 %61  ;;  %1946 = vmatprep.subr.bf16.mxu0 %v1945_v18 }
  0x8a   :  { %vm73_vm8 = vcmp.eq.s32.totalorder %v59_v6, %v2388_v63  ;;  %vm74_vm9 = vcmp.eq.s32.totalorder %v62_v7, %v2388_v63 }
  0x8b   :  { %1492 = vmatmul.mubr.msk.f32.gmra.mrb[2].mxu0 %vm72_vm7, %v2197_v3 }
  0x8c   :  { %1494 = vmatprep.mubr.msk.f32.mxu0 %vm73_vm8, %v2197_v3  ;;  %1948 = vmatpush3.bf16.msra.mxu0 %v1945_v18  ;;  %v2198_v18 = vmov 0.0|0.0  }
  0x8d   :  { %v65_v8 = vpop.permute.xlu0 %64  ;;  %1950 = vmatprep.subr.bf16.mxu0 %v1949_v22 }
  0x8e   :  { %vm75_vm10 = vcmp.eq.s32.totalorder %v65_v8, %v2388_v63 }
  0x8f   :  { %1495 = vmatmul.mubr.msk.f32.gmra.mrb[4].mxu0 %vm74_vm9, %v2197_v3  ;;  %v68_v36 = vpop.permute.xlu1 %67 }
  0x90   :  { %1497 = vmatprep.mubr.msk.f32.mxu0 %vm75_vm10, %v2197_v3  ;;  %1952 = vmatpush3.bf16.msra.mxu0 %v1949_v22  ;;  %vm76_vm15 = vcmp.eq.s32.totalorder %v68_v36, %v2388_v63  ;;  %v499_v63 = vld [vmem:[%s2765_s7 + $0x68] sm:$0xff]  ;;  %v629_v36 = vld [vmem:[%s2767_s8 + $0x38] sm:$0xff] }
  0x91   :  { %1954 = vmatprep.subr.bf16.mxu0 %v1953_v26  ;;  %v1997_v1 = vpack.c.bf16 %v499_v63, %v498_v62  ;;  %v2200_v63 = vmov 0.0  }
  0x93   :  { %1498 = vmatmul.mubr.msk.f32.gmra.mrb[6].mxu0 %vm76_vm15, %v2197_v3 }
  0x94   :  { %1956 = vmatpush3.bf16.msra.mxu0 %v1953_v26 }
  0x95   :  { %1958 = vmatprep.subr.bf16.mxu0 %v1957_v29 }
  0x98   :  { %1960 = vmatpush3.bf16.msra.mxu0 %v1957_v29 }
  0x99   :  { %1962 = vmatprep.subr.bf16.mxu0 %v1961_v30 }
  0x9c   :  { %1964 = vmatpush3.bf16.msra.mxu0 %v1961_v30  ;;  %v626_v30 = vld [vmem:[%s2767_s8 + $0x20] sm:$0xff] }
  0x9d   :  { %1966 = vmatprep.subr.bf16.mxu0 %v1965_v33 }
  0xa0   :  { %1968 = vmatpush3.bf16.msra.mxu0 %v1965_v33 }
  0xa1   :  { %1970 = vmatprep.subr.bf16.mxu0 %v1969_v39 }
  0xa4   :  { %1972 = vmatpush3.bf16.msra.mxu0 %v1969_v39 }
  0xa5   :  { %2005 = vmatprep.subr.bf16.mxu0 %v2198_v18 }
 0x15a   :  { %v1490_v34 = vpop.f32.mrb[0].mxu0 }
 0x15b   :  { %v175_v35 = vpop.f32.mrb[1].mxu0 }
 0x15c   :  { %1532 = vmatprep.mubr.f32.mxu1 %v175_v35  ;;  %v628_v35 = vld [vmem:[%s2767_s8 + $0x30] sm:$0xff] }
 0x15d   :  { %1533 = vmatmul.mubr.f32.vlgmr.msra.gmra.mrb[0].mxu1 %v1490_v34  ;;  %v2551_v34 = vpack.c.bf16 %v627_v31, %v626_v30  ;;  %v2561_v37 = vpack.c.bf16 %v629_v36, %v628_v35 }
 0x15e   :  { %v1493_v40 = vpop.f32.mrb[2].mxu0  ;;  %1976 = vmatpush3.bf16.msra.mxu1 %v1973_v46 }
 0x15f   :  { %v185_v41 = vpop.f32.mrb[3].mxu0  ;;  %1978 = vmatprep.subr.bf16.mxu1 %v1977_v49 }
 0x160   :  { %1535 = vmatprep.mubr.f32.mxu1 %v185_v41 }
 0x161   :  { %1536 = vmatmul.mubr.f32.gmra.mrb[2].mxu1 %v1493_v40 }
 0x162   :  { %v1496_v45 = vpop.f32.mrb[4].mxu0  ;;  %1980 = vmatpush3.bf16.msra.mxu1 %v1977_v49 }
 0x163   :  { %v195_v48 = vpop.f32.mrb[5].mxu0  ;;  %1982 = vmatprep.subr.bf16.mxu1 %v1981_v52 }
 0x164   :  { %1538 = vmatprep.mubr.f32.mxu1 %v195_v48 }
 0x165   :  { %1539 = vmatmul.mubr.f32.gmra.mrb[4].mxu1 %v1496_v45 }
 0x166   :  { %1984 = vmatpush3.bf16.msra.mxu1 %v1981_v52  ;;  %v1499_v7 = vpop.f32.mrb[6].mxu0  ;;  %v631_v52 = vld [vmem:[%s2767_s8 + $0x48] sm:$0xff] }
 0x167   :  { %1986 = vmatprep.subr.bf16.mxu1 %v1985_v55  ;;  %v205_v8 = vpop.f32.mrb[7].mxu0  ;;  %v2589_v53 = vpack.c.bf16 %v631_v52, %v630_v51 }
 0x168   :  { %1541 = vmatprep.mubr.f32.mxu1 %v205_v8 }
 0x169   :  { %1542 = vmatmul.mubr.f32.gmra.mrb[6].mxu1 %v1499_v7 }
 0x16a   :  { %1988 = vmatpush3.bf16.msra.mxu1 %v1985_v55  ;;  %v633_v55 = vld [vmem:[%s2767_s8 + $0x58] sm:$0xff] }
 0x16b   :  { %1990 = vmatprep.subr.bf16.mxu1 %v1989_v58  ;;  %v2601_v56 = vpack.c.bf16 %v633_v55, %v632_v54 }
 0x16e   :  { %1992 = vmatpush3.bf16.msra.mxu1 %v1989_v58  ;;  %v635_v58 = vld [vmem:[%s2767_s8 + $0x68] sm:$0xff] }
 0x16f   :  { %1994 = vmatprep.subr.bf16.mxu1 %v1993_v61  ;;  %v2613_v59 = vpack.c.bf16 %v635_v58, %v634_v57 }
 0x172   :  { %1996 = vmatpush3.bf16.msra.mxu1 %v1993_v61  ;;  %v637_v61 = vld [vmem:[%s2767_s8 + $0x78] sm:$0xff] }
 0x173   :  { %1998 = vmatprep.subr.bf16.mxu1 %v1997_v1  ;;  %v2625_v62 = vpack.c.bf16 %v637_v61, %v636_v60 }
 0x176   :  { %2000 = vmatpush3.bf16.msra.mxu1 %v1997_v1 }
 0x177   :  { %2002 = vmatprep.subr.bf16.mxu1 %v2001_v13 }
 0x17a   :  { %2004 = vmatpush3.bf16.msra.mxu1 %v2001_v13 }
 0x17b   :  { %2029 = vmatprep.subr.bf16.mxu1 %v2198_v18 }
 0x230   :  { %v1534_v3 = vpop.f32.mrb[0].mxu1 }
 0x231   :  { %v309_v4 = vadd.f32 %v1534_v3, %v2510_v2  ;;  %v303_v5 = vpop.f32.mrb[1].mxu1 }
 0x232   :  { %v304_v6 = vadd.f32 %v2510_v2, %v303_v5 }
 0x233   :  { %v343_v10 = vmax.f32 %v309_v4, 0.0 }
 0x234   :  { %v342_v9 = vmax.f32 %v304_v6, 0.0  ;;  %v1537_v14 = vpop.f32.mrb[2].mxu1 }
 0x235   :  { %v319_v15 = vadd.f32 %v1537_v14, %v2510_v2  ;;  %v313_v17 = vpop.f32.mrb[3].mxu1  ;;  %v2640_v14 = vld [vmem:[%s2769_s9] ss:$0 sm:$0xff] }
 0x236   :  { %1576 = vmatprep.mubr.f32.mxu0 %v342_v9  ;;  %v314_v22 = vadd.f32 %v2510_v2, %v313_v17 }
 0x237   :  { %1577 = vmatmul.mubr.f32.vlgmr.msra.gmra.mrb[8].mxu0 %v343_v10  ;;  %v345_v26 = vmax.f32 %v319_v15, 0.0 }
 0x238   :  { %v1540_v23 = vpop.f32.mrb[4].mxu1  ;;  %v344_v28 = vmax.f32 %v314_v22, 0.0  ;;  %2007 = vmatpush3.bf16.msra.mxu0 %v2533_v24 }
 0x239   :  { %v329_v16 = vadd.f32 %v1540_v23, %v2510_v2  ;;  %v323_v27 = vpop.f32.mrb[5].mxu1  ;;  %2008 = vmatprep.subr.bf16.mxu0 %v2198_v18 }
 0x23a   :  { %v324_v29 = vadd.f32 %v2510_v2, %v323_v27  ;;  %1579 = vmatprep.mubr.f32.mxu0 %v344_v28 }
 0x23b   :  { %v347_v33 = vmax.f32 %v329_v16, 0.0  ;;  %1580 = vmatmul.mubr.f32.gmra.mrb[10].mxu0 %v345_v26 }
 0x23c   :  { %v346_v32 = vmax.f32 %v324_v29, 0.0  ;;  %2010 = vmatpush3.bf16.msra.mxu0 %v2541_v0  ;;  %v1543_v39 = vpop.f32.mrb[6].mxu1 }
 0x23d   :  { %2011 = vmatprep.subr.bf16.mxu0 %v2198_v18  ;;  %v339_v40 = vadd.f32 %v1543_v39, %v2510_v2  ;;  %v333_v41 = vpop.f32.mrb[7].mxu1  ;;  %v727_v39 = vpop.permute.xlu1 %726 }
 0x23e   :  { %1582 = vmatprep.mubr.f32.mxu0 %v346_v32  ;;  %v334_v43 = vadd.f32 %v2510_v2, %v333_v41  ;;  %vm728_vm2 = vcmp.eq.s32.totalorder %v727_v39, 1 }
 0x23f   :  { %1583 = vmatmul.mubr.f32.gmra.mrb[12].mxu0 %v347_v33  ;;  %v349_v46 = vmax.f32 %v339_v40, 0.0 }
 0x240   :  { %2013 = vmatpush3.bf16.msra.mxu0 %v2551_v34  ;;  %v348_v48 = vmax.f32 %v334_v43, 0.0 }
 0x241   :  { %2014 = vmatprep.subr.bf16.mxu0 %v2198_v18  ;;  %v889_v55 = vpop.permute.xlu1 %888 }
 0x242   :  { %1585 = vmatprep.mubr.f32.mxu0 %v348_v48  ;;  %vm890_vm4 = vcmp.eq.s32.totalorder %v889_v55, 1 }
 0x243   :  { %1586 = vmatmul.mubr.f32.gmra.mrb[14].mxu0 %v349_v46 }
 0x244   :  { %2016 = vmatpush3.bf16.msra.mxu0 %v2561_v37  ;;  %1664 = vmatprep.mubr.msk.f32.mxu0 %vm2199_vm0, %v2200_v63 }
 0x245   :  { %2017 = vmatprep.subr.bf16.mxu0 %v2198_v18 }
 0x248   :  { %2019 = vmatpush3.bf16.msra.mxu0 %v2589_v53 }
 0x249   :  { %2020 = vmatprep.subr.bf16.mxu0 %v2198_v18 }
 0x24c   :  { %2022 = vmatpush3.bf16.msra.mxu0 %v2601_v56 }
 0x24d   :  { %2023 = vmatprep.subr.bf16.mxu0 %v2198_v18 }
 0x250   :  { %2025 = vmatpush3.bf16.msra.mxu0 %v2613_v59 }
 0x251   :  { %2026 = vmatprep.subr.bf16.mxu0 %v2198_v18 }
 0x254   :  { %2028 = vmatpush3.bf16.msra.mxu0 %v2625_v62 }
 0x255   :  { %2053 = vmatprep.subr.bf16.mxu0 %v2198_v18 }
 0x30a   :  { %v1578_v42 = vpop.f32.mrb[8].mxu0 }
 0x30b   :  { %v445_v44 = vadd.f32 %v1578_v42, %v2569_v38  ;;  %v439_v45 = vpop.f32.mrb[9].mxu0 }
 0x30c   :  { %v440_v47 = vadd.f32 %v2569_v38, %v439_v45 }
 0x30d   :  { %v479_v50 = vmax.f32 %v445_v44, 0.0 }
 0x30e   :  { %v478_v49 = vmax.f32 %v440_v47, 0.0  ;;  %v1581_v1 = vpop.f32.mrb[10].mxu0 }
 0x30f   :  { %v455_v2 = vadd.f32 %v1581_v1, %v2569_v38  ;;  %v449_v3 = vpop.f32.mrb[11].mxu0 }
 0x310   :  { %1620 = vmatprep.mubr.f32.mxu1 %v478_v49  ;;  %v450_v4 = vadd.f32 %v2569_v38, %v449_v3 }
 0x311   :  { %1621 = vmatmul.mubr.f32.vlgmr.msra.gmra.mrb[8].mxu1 %v479_v50  ;;  %v481_v6 = vmax.f32 %v455_v2, 0.0 }
 0x312   :  { %2031 = vmatpush3.bf16.msra.mxu1 %v2533_v24  ;;  %v1584_v5 = vpop.f32.mrb[12].mxu0  ;;  %v480_v9 = vmax.f32 %v450_v4, 0.0 }
 0x313   :  { %2032 = vmatprep.subr.bf16.mxu1 %v2198_v18  ;;  %v465_v7 = vadd.f32 %v1584_v5, %v2569_v38  ;;  %v459_v8 = vpop.f32.mrb[13].mxu0 }
 0x314   :  { %v460_v10 = vadd.f32 %v2569_v38, %v459_v8  ;;  %1623 = vmatprep.mubr.f32.mxu1 %v480_v9 }
 0x315   :  { %v483_v12 = vmax.f32 %v465_v7, 0.0  ;;  %1624 = vmatmul.mubr.f32.gmra.mrb[10].mxu1 %v481_v6 }
 0x316   :  { %2034 = vmatpush3.bf16.msra.mxu1 %v2541_v0  ;;  %v482_v11 = vmax.f32 %v460_v10, 0.0  ;;  %v1587_v13 = vpop.f32.mrb[14].mxu0 }
 0x317   :  { %2035 = vmatprep.subr.bf16.mxu1 %v2198_v18  ;;  %v475_v15 = vadd.f32 %v1587_v13, %v2569_v38  ;;  %v469_v17 = vpop.f32.mrb[15].mxu0 }
 0x318   :  { %1626 = vmatprep.mubr.f32.mxu1 %v482_v11  ;;  %v470_v20 = vadd.f32 %v2569_v38, %v469_v17  ;;  %v646_v38 = vpop.permute.xlu0 %645 }
 0x319   :  { %1627 = vmatmul.mubr.f32.gmra.mrb[12].mxu1 %v483_v12  ;;  %v485_v22 = vmax.f32 %v475_v15, 0.0  ;;  %vm647_vm1 = vcmp.eq.s32.totalorder %v646_v38, 1 }
 0x31a   :  { %2037 = vmatpush3.bf16.msra.mxu1 %v2551_v34  ;;  %v484_v25 = vmax.f32 %v470_v20, 0.0 }
 0x31b   :  { %2038 = vmatprep.subr.bf16.mxu1 %v2198_v18 }
 0x31c   :  { %1629 = vmatprep.mubr.f32.mxu1 %v484_v25  ;;  %v808_v47 = vpop.permute.xlu0 %807 }
 0x31d   :  { %1630 = vmatmul.mubr.f32.gmra.mrb[14].mxu1 %v485_v22  ;;  %vm809_vm3 = vcmp.eq.s32.totalorder %v808_v47, 1 }
 0x31e   :  { %2040 = vmatpush3.bf16.msra.mxu1 %v2561_v37  ;;  %1699 = vmatprep.mubr.msk.f32.mxu1 %vm2199_vm0, %v2200_v63 }
 0x31f   :  { %2041 = vmatprep.subr.bf16.mxu1 %v2198_v18 }
 0x320   :  { %v970_v3 = vpop.permute.xlu0 %969 }
 0x321   :  { %vm971_vm5 = vcmp.eq.s32.totalorder %v970_v3, 1 }
 0x322   :  { %2043 = vmatpush3.bf16.msra.mxu1 %v2589_v53 }
 0x323   :  { %2044 = vmatprep.subr.bf16.mxu1 %v2198_v18 }
 0x326   :  { %2046 = vmatpush3.bf16.msra.mxu1 %v2601_v56 }
 0x327   :  { %2047 = vmatprep.subr.bf16.mxu1 %v2198_v18 }
 0x32a   :  { %2049 = vmatpush3.bf16.msra.mxu1 %v2613_v59 }
 0x32b   :  { %2050 = vmatprep.subr.bf16.mxu1 %v2198_v18 }
 0x32e   :  { %2052 = vmatpush3.bf16.msra.mxu1 %v2625_v62 }
 0x32f   :  { %2077 = vmatprep.subr.bf16.mxu1 %v2198_v18 }
 0x3e4   :  { %v1622_v19 = vpop.f32.mrb[8].mxu1 }
 0x3e5   :  { %v575_v21 = vpop.f32.mrb[9].mxu1  ;;  %v581_v32 = vadd.f32 %v1622_v19, %v2640_v14 }
 0x3e6   :  { %v576_v23 = vadd.f32 %v2640_v14, %v575_v21 }
 0x3e8   :  { %2180 = vtanh.f32 %v576_v23  ;;  %v2665_v16 = vpop.f32.mrb[10].mxu1 }
 0x3e9   :  { %v585_v27 = vpop.f32.mrb[11].mxu1  ;;  %v591_v50 = vadd.f32 %v2665_v16, %v2640_v14 }
 0x3ea   :  { %v586_v43 = vadd.f32 %v2640_v14, %v585_v27 }
 0x3ec   :  { %v2667_v28 = vpop.f32.mrb[12].mxu1 }
 0x3ed   :  { %v2669_v29 = vpop.f32.mrb[13].mxu1 }
 0x3ee   :  { %v596_v60 = vadd.f32 %v2640_v14, %v2669_v29 }
 0x3f0   :  { %v2671_v30 = vpop.f32.mrb[14].mxu1 }
 0x3f1   :  { %v2673_v31 = vpop.f32.mrb[15].mxu1  ;;  %v611_v10 = vadd.f32 %v2671_v30, %v2640_v14 }
 0x3f2   :  { %v2181_v26 = vpop.eup %2180 }
 0x3f3   :  { %1665 = vmatmul.mubr.f32.vlgmr.msra.gmra.mrb[16].mxu0 %v2181_v26  ;;  %v648_v41 = vsel %vm647_vm1, %v2181_v26, 0.0 }
 0x3f4   :  { %2055 = vmatpush3.bf16.msra.mxu0 %v2533_v24  ;;  %1734 = vmatprep.mubr.msk.f32.mxu0 %vm2199_vm0, %v2200_v63 }
 0x3f5   :  { %2056 = vmatprep.subr.bf16.mxu0 %v2198_v18 }
 0x3f8   :  { %2058 = vmatpush3.bf16.msra.mxu0 %v2541_v0 }
 0x3f9   :  { %2059 = vmatprep.subr.bf16.mxu0 %v2198_v18 }
 0x3fc   :  { %2061 = vmatpush3.bf16.msra.mxu0 %v2551_v34 }
 0x3fd   :  { %2062 = vmatprep.subr.bf16.mxu0 %v2198_v18 }
 0x400   :  { %2064 = vmatpush3.bf16.msra.mxu0 %v2561_v37 }
 0x401   :  { %2065 = vmatprep.subr.bf16.mxu0 %v2198_v18 }
 0x404   :  { %2067 = vmatpush3.bf16.msra.mxu0 %v2589_v53 }
 0x405   :  { %2068 = vmatprep.subr.bf16.mxu0 %v2198_v18 }
 0x408   :  { %2070 = vmatpush3.bf16.msra.mxu0 %v2601_v56 }
 0x409   :  { %2071 = vmatprep.subr.bf16.mxu0 %v2198_v18 }
 0x40c   :  { %2073 = vmatpush3.bf16.msra.mxu0 %v2613_v59 }
 0x40d   :  { %2074 = vmatprep.subr.bf16.mxu0 %v2198_v18 }
 0x410   :  { %2076 = vmatpush3.bf16.msra.mxu0 %v2625_v62 }
 0x411   :  { %2101 = vmatprep.subr.bf16.mxu0 %v2198_v18 }
 0x4c6   :  { %v717_v33 = vpop.f32.mrb[16].mxu0 }
 0x4c7   :  { %v721_v35 = vadd.f32 %v717_v33, %v581_v32  ;;  %v1666_v36 = vpop.f32.mrb[17].mxu0 }
 0x4c9   :  { %2182 = vtanh.f32 %v721_v35 }
 0x4d3   :  { %v2183_v40 = vpop.eup %2182 }
 0x4d4   :  { %v729_v42 = vsel %vm728_vm2, %v2183_v40, %v648_v41  ;;  %1700 = vmatmul.mubr.f32.vlgmr.msra.gmra.mrb[16].mxu1 %v2183_v40 }
 0x4d5   :  { %2079 = vmatpush3.bf16.msra.mxu1 %v2533_v24  ;;  %1769 = vmatprep.mubr.msk.f32.mxu1 %vm2199_vm0, %v2200_v63 }
 0x4d6   :  { %2080 = vmatprep.subr.bf16.mxu1 %v2198_v18 }
 0x4d9   :  { %2082 = vmatpush3.bf16.msra.mxu1 %v2541_v0 }
 0x4da   :  { %2083 = vmatprep.subr.bf16.mxu1 %v2198_v18 }
 0x4dd   :  { %2085 = vmatpush3.bf16.msra.mxu1 %v2551_v34 }
 0x4de   :  { %2086 = vmatprep.subr.bf16.mxu1 %v2198_v18 }
 0x4e1   :  { %2088 = vmatpush3.bf16.msra.mxu1 %v2561_v37 }
 0x4e2   :  { %2089 = vmatprep.subr.bf16.mxu1 %v2198_v18 }
 0x4e5   :  { %2091 = vmatpush3.bf16.msra.mxu1 %v2589_v53 }
 0x4e6   :  { %2092 = vmatprep.subr.bf16.mxu1 %v2198_v18 }
 0x4e9   :  { %2094 = vmatpush3.bf16.msra.mxu1 %v2601_v56 }
 0x4ea   :  { %2095 = vmatprep.subr.bf16.mxu1 %v2198_v18 }
 0x4ed   :  { %2097 = vmatpush3.bf16.msra.mxu1 %v2613_v59 }
 0x4ee   :  { %2098 = vmatprep.subr.bf16.mxu1 %v2198_v18 }
 0x4f1   :  { %2100 = vmatpush3.bf16.msra.mxu1 %v2625_v62 }
 0x4f2   :  { %2125 = vmatprep.subr.bf16.mxu1 %v2198_v18 }
 0x5a7   :  { %v798_v44 = vpop.f32.mrb[16].mxu1 }
 0x5a8   :  { %v802_v45 = vadd.f32 %v798_v44, %v586_v43  ;;  %v1701_v46 = vpop.f32.mrb[17].mxu1 }
 0x5aa   :  { %2184 = vtanh.f32 %v802_v45 }
 0x5b4   :  { %v2185_v48 = vpop.eup %2184 }
 0x5b5   :  { %v810_v49 = vsel %vm809_vm3, %v2185_v48, %v729_v42  ;;  %1735 = vmatmul.mubr.f32.vlgmr.msra.gmra.mrb[18].mxu0 %v2185_v48 }
 0x5b6   :  { %2103 = vmatpush3.bf16.msra.mxu0 %v2533_v24  ;;  %1804 = vmatprep.mubr.msk.f32.mxu0 %vm2199_vm0, %v2200_v63 }
 0x5b7   :  { %2104 = vmatprep.subr.bf16.mxu0 %v2198_v18 }
 0x5ba   :  { %2106 = vmatpush3.bf16.msra.mxu0 %v2541_v0 }
 0x5bb   :  { %2107 = vmatprep.subr.bf16.mxu0 %v2198_v18 }
 0x5be   :  { %2109 = vmatpush3.bf16.msra.mxu0 %v2551_v34 }
 0x5bf   :  { %2110 = vmatprep.subr.bf16.mxu0 %v2198_v18 }
 0x5c2   :  { %2112 = vmatpush3.bf16.msra.mxu0 %v2561_v37 }
 0x5c3   :  { %2113 = vmatprep.subr.bf16.mxu0 %v2198_v18 }
 0x5c6   :  { %2115 = vmatpush3.bf16.msra.mxu0 %v2589_v53 }
 0x5c7   :  { %2116 = vmatprep.subr.bf16.mxu0 %v2198_v18 }
 0x5ca   :  { %2118 = vmatpush3.bf16.msra.mxu0 %v2601_v56 }
 0x5cb   :  { %2119 = vmatprep.subr.bf16.mxu0 %v2198_v18 }
 0x5ce   :  { %2121 = vmatpush3.bf16.msra.mxu0 %v2613_v59 }
 0x5cf   :  { %2122 = vmatprep.subr.bf16.mxu0 %v2198_v18 }
 0x5d2   :  { %2124 = vmatpush3.bf16.msra.mxu0 %v2625_v62 }
 0x5d3   :  { %2149 = vmatprep.subr.bf16.mxu0 %v2198_v18 }
 0x688   :  { %v879_v51 = vpop.f32.mrb[18].mxu0 }
 0x689   :  { %v883_v52 = vadd.f32 %v879_v51, %v591_v50  ;;  %v1736_v54 = vpop.f32.mrb[19].mxu0 }
 0x68b   :  { %2186 = vtanh.f32 %v883_v52 }
 0x695   :  { %v2187_v57 = vpop.eup %2186 }
 0x696   :  { %v891_v58 = vsel %vm890_vm4, %v2187_v57, %v810_v49  ;;  %1770 = vmatmul.mubr.f32.vlgmr.msra.gmra.mrb[18].mxu1 %v2187_v57 }
 0x697   :  { %2127 = vmatpush3.bf16.msra.mxu1 %v2533_v24  ;;  %1839 = vmatprep.mubr.msk.f32.mxu1 %vm2199_vm0, %v2200_v63 }
 0x698   :  { %2128 = vmatprep.subr.bf16.mxu1 %v2198_v18 }
 0x69b   :  { %2130 = vmatpush3.bf16.msra.mxu1 %v2541_v0 }
 0x69c   :  { %2131 = vmatprep.subr.bf16.mxu1 %v2198_v18 }
 0x69f   :  { %2133 = vmatpush3.bf16.msra.mxu1 %v2551_v34 }
 0x6a0   :  { %2134 = vmatprep.subr.bf16.mxu1 %v2198_v18 }
 0x6a3   :  { %2136 = vmatpush3.bf16.msra.mxu1 %v2561_v37 }
 0x6a4   :  { %2137 = vmatprep.subr.bf16.mxu1 %v2198_v18 }
 0x6a7   :  { %2139 = vmatpush3.bf16.msra.mxu1 %v2589_v53 }
 0x6a8   :  { %2140 = vmatprep.subr.bf16.mxu1 %v2198_v18 }
 0x6ab   :  { %2142 = vmatpush3.bf16.msra.mxu1 %v2601_v56 }
 0x6ac   :  { %2143 = vmatprep.subr.bf16.mxu1 %v2198_v18 }
 0x6af   :  { %2145 = vmatpush3.bf16.msra.mxu1 %v2613_v59 }
 0x6b0   :  { %2146 = vmatprep.subr.bf16.mxu1 %v2198_v18 }
 0x6b3   :  { %2148 = vmatpush3.bf16.msra.mxu1 %v2625_v62 }
 0x769   :  { %v960_v61 = vpop.f32.mrb[18].mxu1 }
 0x76a   :  { %v964_v1 = vadd.f32 %v960_v61, %v596_v60  ;;  %v1771_v2 = vpop.f32.mrb[19].mxu1 }
 0x76c   :  { %2188 = vtanh.f32 %v964_v1 }
 0x776   :  { %v2189_v4 = vpop.eup %2188 }
 0x777   :  { %v972_v5 = vsel %vm971_vm5, %v2189_v4, %v891_v58  ;;  %1805 = vmatmul.mubr.f32.vlgmr.msra.gmra.mrb[20].mxu0 %v2189_v4 }
 0x778   :  { %2151 = vmatpush3.bf16.msra.mxu0 %v2533_v24  ;;  %1874 = vmatprep.mubr.msk.f32.mxu0 %vm2199_vm0, %v2200_v63  ;;  %v601_v24 = vadd.f32 %v2667_v28, %v2640_v14 }
 0x779   :  { %2152 = vmatprep.subr.bf16.mxu0 %v2198_v18 }
 0x77c   :  { %2154 = vmatpush3.bf16.msra.mxu0 %v2541_v0 }
 0x77d   :  { %2155 = vmatprep.subr.bf16.mxu0 %v2198_v18 }
 0x780   :  { %2157 = vmatpush3.bf16.msra.mxu0 %v2551_v34 }
 0x781   :  { %2158 = vmatprep.subr.bf16.mxu0 %v2198_v18 }
 0x784   :  { %2160 = vmatpush3.bf16.msra.mxu0 %v2561_v37 }
 0x785   :  { %2161 = vmatprep.subr.bf16.mxu0 %v2198_v18 }
 0x788   :  { %2163 = vmatpush3.bf16.msra.mxu0 %v2589_v53  ;;  %v1051_v53 = vpop.permute.xlu1 %1050 }
 0x789   :  { %2164 = vmatprep.subr.bf16.mxu0 %v2198_v18  ;;  %vm1052_vm6 = vcmp.eq.s32.totalorder %v1051_v53, 1 }
 0x78c   :  { %2166 = vmatpush3.bf16.msra.mxu0 %v2601_v56  ;;  %v606_v56 = vadd.f32 %v2640_v14, %v2673_v31  ;;  %v1213_v15 = vpop.permute.xlu1 %1212 }
 0x78d   :  { %2167 = vmatprep.subr.bf16.mxu0 %v2198_v18  ;;  %vm1214_vm8 = vcmp.eq.s32.totalorder %v1213_v15, 1 }
 0x790   :  { %2169 = vmatpush3.bf16.msra.mxu0 %v2613_v59 }
 0x791   :  { %2170 = vmatprep.subr.bf16.mxu0 %v2198_v18 }
 0x794   :  { %2172 = vmatpush3.bf16.msra.mxu0 %v2625_v62  ;;  %v1132_v62 = vpop.permute.xlu0 %1131 }
 0x795   :  { %vm1133_vm7 = vcmp.eq.s32.totalorder %v1132_v62, 1 }
 0x84a   :  { %v1041_v0 = vpop.f32.mrb[20].mxu0 }
 0x84b   :  { %v1045_v34 = vadd.f32 %v1041_v0, %v601_v24  ;;  %v1806_v37 = vpop.f32.mrb[21].mxu0 }
 0x84d   :  { %2190 = vtanh.f32 %v1045_v34 }
 0x857   :  { %v2191_v63 = vpop.eup %2190 }
 0x858   :  { %v1053_v6 = vsel %vm1052_vm6, %v2191_v63, %v972_v5  ;;  %1840 = vmatmul.mubr.f32.vlgmr.msra.gmra.mrb[20].mxu1 %v2191_v63 }
 0x92b   :  { %v1122_v59 = vpop.f32.mrb[20].mxu1 }
 0x92c   :  { %v1126_v7 = vadd.f32 %v1122_v59, %v606_v56  ;;  %v1841_v18 = vpop.f32.mrb[21].mxu1 }
 0x92e   :  { %2192 = vtanh.f32 %v1126_v7 }
 0x938   :  { %v2193_v8 = vpop.eup %2192 }
 0x939   :  { %v1134_v9 = vsel %vm1133_vm7, %v2193_v8, %v1053_v6  ;;  %1875 = vmatmul.mubr.f32.vlgmr.msra.gmra.mrb[22].mxu0 %v2193_v8 }
 0xa0c   :  { %v1203_v11 = vpop.f32.mrb[22].mxu0 }
 0xa0d   :  { %v1207_v12 = vadd.f32 %v1203_v11, %v611_v10  ;;  %v1876_v13 = vpop.f32.mrb[23].mxu0 }
 0xa0f   :  { %2194 = vtanh.f32 %v1207_v12 }
 0xa19   :  { %v2195_v17 = vpop.eup %2194 }
 0xa1a   :  { %v1215_v19 = vsel %vm1214_vm8, %v2195_v17, %v1134_v9 }
 0xa1b   :  { %1216 = vst [vmem:[%s2770_s10] sm:$0xff] %v1215_v19 }

</bundles_post_ra>
